<compile_context>
chip_gen: v5e
topology: v5e:2x2
jax: 0.10.0
libtpu: 0.0.40
codegen_flags: <defaults>
</compile_context>

<pallas_src>
import jax
import jax.numpy as jnp
from jax.experimental import pallas as pl
from jax.experimental.pallas import tpu as pltpu


LANES = 128          # f32 vreg lane width
MAX_ROW_TILE = 512   # 512 x 128 f32 = 256 KiB per plane per pipeline buffer


def logistic_kernel(w_ref, x0_ref, x1_ref, o_ref):
    """w_ref: SMEM (2,) weight scalars. x*_ref/o_ref: lane-dense (rows,128) tiles."""
    w0 = w_ref[0]
    w1 = w_ref[1]
    # Two VPU multiply-adds instead of a K=2,N=1 MXU contraction.
    z = x0_ref[...] * w0 + x1_ref[...] * w1
    # sigmoid(z) = 1 / (1 + exp(-z)); exp and approx reciprocal both go to the EUP.
    o_ref[...] = pl.reciprocal(1.0 + jnp.exp(-z), approx=True)


def simple_logistic(x, weight):
    """SimpleLogistic forward: sigmoid(x @ weight.T).

    x:      (B, 2) float32
    weight: (1, 2) float32 (PyTorch nn.Linear layout: (out_features, in_features))
    returns (B, 1), dtype of x.
    """
    B, F = x.shape
    assert F == 2 and weight.shape == (1, 2)

    w_flat = weight.reshape(2).astype(jnp.float32)   # (w0, w1) -> SMEM

    # --- wrapper-side lane-dense re-layout (pure layout plumbing, no compute) ---
    rows = -(-B // LANES)                            # ceil(B / 128)
    if rows <= MAX_ROW_TILE:
        row_tile = rows                              # block == full extent (legal)
        rows_p = rows
    else:
        row_tile = MAX_ROW_TILE                      # multiple of 8
        rows_p = -(-rows // row_tile) * row_tile
    Bp = rows_p * LANES

    xp = jnp.zeros((Bp, 2), jnp.float32).at[:B, :].set(x.astype(jnp.float32))
    x0 = xp[:, 0].reshape(rows_p, LANES)             # feature-0 plane, lane-dense
    x1 = xp[:, 1].reshape(rows_p, LANES)             # feature-1 plane, lane-dense

    grid = (rows_p // row_tile,)

    out_planes = pl.pallas_call(
        logistic_kernel,
        out_shape=jax.ShapeDtypeStruct((rows_p, LANES), jnp.float32),
        grid_spec=pltpu.PrefetchScalarGridSpec(
            num_scalar_prefetch=1,                   # w_flat lands in SMEM
            grid=grid,
            in_specs=[
                pl.BlockSpec((row_tile, LANES), lambda i, w: (i, 0)),
                pl.BlockSpec((row_tile, LANES), lambda i, w: (i, 0)),
            ],
            out_specs=pl.BlockSpec((row_tile, LANES), lambda i, w: (i, 0)),
        ),
        compiler_params=pltpu.CompilerParams(
            dimension_semantics=("parallel",),       # independent batch tiles
        ),
    )(w_flat, x0, x1)

    # Back to the module's (B, 1) output layout; drop padding rows (sigmoid(0)=0.5).
    return out_planes.reshape(Bp)[:B].reshape(B, 1).astype(x.dtype)


def reference(x, weight):
    return jax.nn.sigmoid(x @ weight.T)


if __name__ == "__main__":
    key = jax.random.PRNGKey(0)
    kx, kw, kx2 = jax.random.split(key, 3)

    # PyTorch weight layout (out=1, in=2) with the default uniform init bound.
    bound = 1.0 / jnp.sqrt(2.0)
    weight = jax.random.uniform(kw, (1, 2), minval=-bound, maxval=bound,
                                dtype=jnp.float32)

    # Small shape consistent with the module: batch=8, in_features=2.
    B = 8
    x = jax.random.normal(kx, (B, 2), dtype=jnp.float32)
    out = simple_logistic(x, weight)
    jax.block_until_ready(out)
    ref = reference(x, weight)
    assert out.shape == (B, 1)
    # approx reciprocal in the sigmoid denominator -> ~1e-3 tolerance.
    assert jnp.allclose(out, ref, atol=2e-3, rtol=2e-3)

    # Second check exercising the padding / slicing path (B not a multiple of 128).
    B2 = 300
    x2 = jax.random.normal(kx2, (B2, 2), dtype=jnp.float32)
    out2 = simple_logistic(x2, weight)
    jax.block_until_ready(out2)
    ref2 = reference(x2, weight)
    assert out2.shape == (B2, 1)
    assert jnp.allclose(out2, ref2, atol=2e-3, rtol=2e-3)

    print("KERNEL_OK")
</pallas_src>

<mosaic_0001>
module attributes {stable_mosaic.version = 11 : i64} {
  func.func @logistic_kernel(%arg0: i32, %arg1: memref<2xf32, #tpu.memory_space<smem>>, %arg2: memref<1x128xf32, #tpu.memory_space<vmem>>, %arg3: memref<1x128xf32, #tpu.memory_space<vmem>>, %arg4: memref<1x128xf32, #tpu.memory_space<vmem>>) attributes {dimension_semantics = [#tpu.dimension_semantics<parallel>], iteration_bounds = array<i64: 1>, scalar_prefetch = 1 : i64, scratch_operands = 0 : i64, tpu.core_type = #tpu.core_type<tc>, window_params = [{transform_indices = @transform_0, window_bounds = array<i64: 1, 128>}, {transform_indices = @transform_1, window_bounds = array<i64: 1, 128>}, {transform_indices = @transform_2, window_bounds = array<i64: 1, 128>}]} {
    %c0 = arith.constant 0 : index
    %0 = memref.load %arg1[%c0] : memref<2xf32, #tpu.memory_space<smem>>
    %c1 = arith.constant 1 : index
    %1 = memref.load %arg1[%c1] : memref<2xf32, #tpu.memory_space<smem>>
    %c0_0 = arith.constant 0 : index
    %c0_1 = arith.constant 0 : index
    %2 = vector.load %arg2[%c0_0, %c0_1] : memref<1x128xf32, #tpu.memory_space<vmem>>, vector<1x128xf32>
    %3 = vector.broadcast %0 : f32 to vector<1x128xf32>
    %4 = arith.mulf %2, %3 : vector<1x128xf32>
    %c0_2 = arith.constant 0 : index
    %c0_3 = arith.constant 0 : index
    %5 = vector.load %arg3[%c0_2, %c0_3] : memref<1x128xf32, #tpu.memory_space<vmem>>, vector<1x128xf32>
    %6 = vector.broadcast %1 : f32 to vector<1x128xf32>
    %7 = arith.mulf %5, %6 : vector<1x128xf32>
    %8 = arith.addf %4, %7 : vector<1x128xf32>
    %cst = arith.constant 0.000000e+00 : f32
    %9 = vector.broadcast %cst : f32 to vector<1x128xf32>
    %10 = arith.subf %9, %8 : vector<1x128xf32>
    %11 = math.exp %10 : vector<1x128xf32>
    %cst_4 = arith.constant 1.000000e+00 : f32
    %12 = vector.broadcast %cst_4 : f32 to vector<1x128xf32>
    %13 = arith.addf %12, %11 : vector<1x128xf32>
    %14 = tpu.reciprocal %13 {approx = true} : vector<1x128xf32> -> vector<1x128xf32>
    %c0_5 = arith.constant 0 : index
    %c0_6 = arith.constant 0 : index
    %15 = vector.load %arg4[%c0_5, %c0_6] : memref<1x128xf32, #tpu.memory_space<vmem>>, vector<1x128xf32>
    tpu.vector_store %arg4[%c0_5, %c0_6], %14 {strides = array<i32>} : memref<1x128xf32, #tpu.memory_space<vmem>>, vector<1x128xf32>,
    return
  }
  func.func @transform_0(%arg0: i32, %arg1: memref<2xf32, #tpu.memory_space<smem>>) -> (i32, i32) {
    %c0_i32 = arith.constant 0 : i32
    %c0_i32_0 = arith.constant 0 : i32
    return %arg0, %c0_i32 : i32, i32
  }
  func.func @transform_1(%arg0: i32, %arg1: memref<2xf32, #tpu.memory_space<smem>>) -> (i32, i32) {
    %c0_i32 = arith.constant 0 : i32
    %c0_i32_0 = arith.constant 0 : i32
    return %arg0, %c0_i32 : i32, i32
  }
  func.func @transform_2(%arg0: i32, %arg1: memref<2xf32, #tpu.memory_space<smem>>) -> (i32, i32) {
    %c0_i32 = arith.constant 0 : i32
    %c0_i32_0 = arith.constant 0 : i32
    return %arg0, %c0_i32 : i32, i32
  }
}

</mosaic_0001>

<bundles_post_ra>
// kernel: tpu_custom_call.1
= control target key start
LH: loop header
LB: loop body
LE: loop exit
PB: predicated region body
PF: predicated region fallthrough
CT: control target
= control target key end

     0   :  { %s141_s15 = smov [#allocation3]   ;;  %s176_s0 = inlined_call_operand.hbm [shape: f32[2], index: 0, kind: input, shape index: {}]   ;;  %s177_s1 = inlined_call_operand.hbm [shape: f32[1,128], index: 1, kind: input, shape index: {}]   ;;  %s178_s2 = inlined_call_operand.vmem [shape: f32[1,128], index: 2, kind: input, shape index: {}]   ;;  %s179_s3 = inlined_call_operand.hbm [shape: f32[1,128], index: 3, kind: output, shape index: {}]  }
   0x1   :  { %s9_s14 = sshll.u32 %s176_s0, 4  ;;  %s10_s14 = int_to_ptr.hbm [resolvable:$true] %s9_s14 }
   0x2   :  { %12 = dma.hbm_to_smem %s10_s14, 16, %s141_s15, [#allocation2] }
   0x3   :  { %135 = dma.done.wait [#allocation2], 16 }
   0x4   :  { %136 = vsyncadd [#allocation2], 4294967280 }
   0x5   :  { %15 = sfence }
   0x6   :  { %16 = vsyncpa [#allocation5], 0 }
   0x7   :  { %17 = vsyncpa [#allocation6], 0  ;;  %s23_s18 = sshll.u32 %s177_s1, 4  ;;  %s142_s19 = smov [#allocation4]   ;;  %s24_s18 = int_to_ptr.hbm [resolvable:$true] %s23_s18 }
   0x8   :  { %s25_s20 = sshll.u32 %s142_s19, 4  ;;  %s26_s20 = int_to_ptr.vmem [resolvable:$true] %s25_s20 }
   0x9   :  { %28 = dma.hbm_to_vmem [thread:$0]  %s24_s18, 16, %s26_s20, [#allocation5]  }
   0xa   :  { %137 = dma.done.wait [#allocation5], 16  }
   0xb   :  { %138 = vsyncadd [#allocation5], 4294967280  ;;  %s35_s0 = sld [smem:[#allocation3]]  ;;  %v37_v0 = vld [vmem:[#allocation4] sm:$0x1]  ;;  %s143_s1 = smov [#allocation7]  }
   0xc   :  { %s67_s21 = sld [smem:[#allocation3 + $0x1]]  ;;  %v40_v2 = vld [vmem:[%s178_s2] sm:$0x1]  ;;  %s55_s24 = sshll.u32 %s143_s1, 4  ;;  %s56_s24 = int_to_ptr.vmem [resolvable:$true] %s55_s24 }
   0xd   :  { %s57_s27 = sshll.u32 %s179_s3, 4  ;;  %s58_s27 = int_to_ptr.hbm [resolvable:$true] %s57_s27 }
  0x11   :  { %v38_v1 = vstv %s35_s0 }
  0x12   :  { %v39_v3 = vmul.f32 %v38_v1, %v37_v0  ;;  %v41_v4 = vstv %s67_s21 }
  0x13   :  { %v42_v5 = vmul.f32 %v41_v4, %v40_v2 }
  0x15   :  { %v43_v6 = vadd.f32 %v42_v5, %v39_v3 }
  0x17   :  { %v44_v7 = vsub.f32 0.0, %v43_v6 }
  0x19   :  { %v45_v8 = vmul.f32 1.442695, %v44_v7 }
  0x1b   :  { %71 = vpow2.f32 %v45_v8 }
  0x21   :  { %v72_v9 = vpop.eup %71 }
  0x22   :  { %v47_v10 = vadd.f32 1.0, %v72_v9 }
  0x24   :  { %73 = vrcp.f32 %v47_v10 }
  0x2a   :  { %v74_v11 = vpop.eup %73 }
  0x2b   :  { %49 = vst [vmem:[#allocation7] sm:$0x1] %v74_v11 }
  0x2c   :  { %60 = dma.vmem_to_hbm [thread:$0]  %s56_s24, 16, %s58_s27, [#allocation6]  }
  0x2d   :  { %139 = dma.done.wait [#allocation6], 16  }
  0x2e   :  { %140 = vsyncadd [#allocation6], 4294967280 }
  0x2f   :  { %65 = vsyncpa [#allocation5], 1 }
  0x30   :  { %66 = vsyncpa [#allocation6], 1 }

</bundles_post_ra>
